<compile_context>
chip_gen: v7x
topology: tpu7x:2x2x1
jax: 0.10.0
libtpu: 0.0.40
codegen_flags: <defaults>
</compile_context>

<pallas_src>
import functools

import jax
import jax.numpy as jnp
from jax import lax
from jax.experimental import pallas as pl
from jax.experimental.pallas import tpu as pltpu


def _round_up(a, b):
    return (a + b - 1) // b * b


def _cdiv(a, b):
    return (a + b - 1) // b


def _vmem_capacity_bytes():
    # Generation-aware VMEM capacity (v5e/v6e: 128 MiB, v7x: 64 MiB per TC).
    try:
        cap = getattr(pltpu.get_tpu_info(), "vmem_capacity_bytes", None)
        if cap:
            return int(cap)
    except Exception:
        pass
    return 64 * 1024 * 1024  # conservative default (v7x per-TensorCore)


def _vmem_budgets():
    cap = _vmem_capacity_bytes()
    # Working-set budget ~3/8 of physical VMEM, scoped limit ~3/4 (2x headroom
    # over the estimate).  v7x: 24 / 48 MiB.  v5e/v6e: 48 / 96 MiB.
    budget = min(48 * 1024 * 1024, (cap * 3) // 8)
    vmem_limit = min(96 * 1024 * 1024, (cap * 3) // 4)
    return budget, vmem_limit


# ----------------------------------------------------------------------------
# Column kernel: class axis on sublanes, positions lane-dense (NCHW fast path).
# ----------------------------------------------------------------------------
def _ls_ce_cols_kernel(x_ref, t_ref, out_ref, *, alpha, ignore_index, hw, c, tile_hw):
    x = x_ref[0].astype(jnp.float32)          # (C, tile_hw)
    tgt = t_ref[0]                            # (1, tile_hw) int32

    # log-sum-exp over the class (sublane) axis; log-softmax never materialized.
    m = jnp.max(x, axis=0, keepdims=True)
    lse = m + jnp.log(jnp.sum(jnp.exp(x - m), axis=0, keepdims=True))

    # Fused gather + smooth term: one weighted class-axis reduction.
    cls = lax.broadcasted_iota(jnp.int32, (c, tile_hw), 0)
    w = jnp.where(cls == tgt, (1.0 - alpha) + alpha / c, alpha / c)
    loss = lse - jnp.sum(w * x, axis=0, keepdims=True)   # (1, tile_hw)

    # Masking: ragged tail only if it can statically occur; ignore_index only if set.
    valid = None
    if hw % tile_hw != 0:
        pos = pl.program_id(1) * tile_hw + lax.broadcasted_iota(jnp.int32, (1, tile_hw), 1)
        valid = pos < hw
    if ignore_index >= 0:
        ig = tgt != ignore_index
        valid = ig if valid is None else jnp.logical_and(valid, ig)
    if valid is not None:
        # jnp.where (select), so Inf/NaN from garbage tail lanes cannot leak.
        loss = jnp.where(valid, loss, 0.0)

    out_ref[0, 0] = loss


def _launch_cols(x3, t3, alpha, ignore_index, tile_cap):
    N, C, HW = x3.shape
    itemsize = jnp.dtype(x3.dtype).itemsize
    budget, vmem_limit = _vmem_budgets()

    # Per-lane-position VMEM footprint, including sublane padding of the
    # second-to-last dim (8 for 32-bit, 16 for 16-bit, 32 for 8-bit dtypes).
    c_in = _round_up(C, max(8, 32 // itemsize))
    c_f32 = _round_up(C, 8)
    per_pos = (2 * c_in * itemsize        # double-buffered logits tile
               + 2 * 8 * 4                # double-buffered int32 targets (1 -> 8 sublanes)
               + 2 * 8 * 4                # double-buffered f32 output partials
               + 2 * c_f32 * 4            # f32 upcast + one full (C, tile) temp
               + 6 * 8 * 4)               # small (1, tile) f32/int32 rows

    if per_pos * 128 > budget:
        # TODO(synk): vocab-scale C needs a class-axis grid dim + online logsumexp.
        raise NotImplementedError(
            f"class dim C={C} too large for the single-pass kernel "
            f"(VMEM budget {budget} bytes)")

    tile_max = min(tile_cap, max(128, (budget // per_pos) // 128 * 128))
    tile_hw = HW if HW <= tile_max else tile_max
    num_j = _cdiv(HW, tile_hw)

    kernel = functools.partial(
        _ls_ce_cols_kernel, alpha=float(alpha), ignore_index=int(ignore_index),
        hw=HW, c=C, tile_hw=tile_hw)

    cost = pl.CostEstimate(
        flops=int(6 * N * C * HW),
        transcendentals=int(N * C * HW + N * HW),
        bytes_accessed=int(x3.size * itemsize + t3.size * 4 + N * num_j * tile_hw * 4))

    partials = pl.pallas_call(
        kernel,
        out_shape=jax.ShapeDtypeStruct((N, num_j, 1, tile_hw), jnp.float32),
        grid_spec=pltpu.PrefetchScalarGridSpec(
            num_scalar_prefetch=0,
            grid=(N, num_j),
            in_specs=[
                pl.BlockSpec((1, C, tile_hw), lambda n, j: (n, 0, j)),   # logits
                pl.BlockSpec((1, 1, tile_hw), lambda n, j: (n, 0, j)),   # targets
            ],
            out_specs=pl.BlockSpec((1, 1, 1, tile_hw), lambda n, j: (n, j, 0, 0)),
        ),
        compiler_params=pltpu.CompilerParams(
            dimension_semantics=("parallel", "parallel"),
            vmem_limit_bytes=vmem_limit,
        ),
        cost_estimate=cost,
    )(x3, t3)
    return jnp.sum(partials)


# ----------------------------------------------------------------------------
# Row kernel: rows on sublanes, class axis lane-resident (2D inputs, largish C).
# ----------------------------------------------------------------------------
def _ls_ce_rows_kernel(x_ref, t_ref, out_ref, *, alpha, ignore_index, n_rows, c, tile_m):
    x = x_ref[...].astype(jnp.float32)        # (tile_m, C)
    tgt = t_ref[...]                          # (tile_m, 1) int32

    m = jnp.max(x, axis=-1, keepdims=True)
    lse = m + jnp.log(jnp.sum(jnp.exp(x - m), axis=-1, keepdims=True))

    cls = lax.broadcasted_iota(jnp.int32, (tile_m, c), 1)
    w = jnp.where(cls == tgt, (1.0 - alpha) + alpha / c, alpha / c)
    loss = lse - jnp.sum(w * x, axis=-1, keepdims=True)  # (tile_m, 1)

    valid = None
    if n_rows % tile_m != 0:
        row = pl.program_id(0) * tile_m + lax.broadcasted_iota(jnp.int32, (tile_m, 1), 0)
        valid = row < n_rows
    if ignore_index >= 0:
        ig = tgt != ignore_index
        valid = ig if valid is None else jnp.logical_and(valid, ig)
    if valid is not None:
        loss = jnp.where(valid, loss, 0.0)

    out_ref[...] = loss


def _launch_rows(x2, t2, alpha, ignore_index, tile_cap):
    M, C = x2.shape
    itemsize = jnp.dtype(x2.dtype).itemsize
    budget, vmem_limit = _vmem_budgets()

    # Per-row VMEM footprint, including lane padding of the last dim to 128.
    c_lane = _round_up(C, 128)
    per_row = (2 * c_lane * itemsize      # double-buffered logits tile
               + 2 * 128 * 4              # double-buffered int32 targets (1 -> 128 lanes)
               + 2 * 128 * 4              # double-buffered f32 output partials
               + 2 * c_lane * 4           # f32 upcast + one full (tile, C) temp
               + 6 * 128 * 4)             # small (tile, 1) f32/int32 columns

    if per_row * 8 > budget:
        # TODO(synk): vocab-scale C needs a class-axis grid dim + online logsumexp.
        raise NotImplementedError(
            f"class dim C={C} too large for the single-pass kernel "
            f"(VMEM budget {budget} bytes)")

    tile_max = min(tile_cap, max(8, (budget // per_row) // 8 * 8))
    tile_m = M if M <= tile_max else tile_max
    num_i = _cdiv(M, tile_m)

    kernel = functools.partial(
        _ls_ce_rows_kernel, alpha=float(alpha), ignore_index=int(ignore_index),
        n_rows=M, c=C, tile_m=tile_m)

    cost = pl.CostEstimate(
        flops=int(6 * M * C),
        transcendentals=int(M * C + M),
        bytes_accessed=int(x2.size * itemsize + t2.size * 4 + num_i * tile_m * 4))

    partials = pl.pallas_call(
        kernel,
        out_shape=jax.ShapeDtypeStruct((num_i * tile_m, 1), jnp.float32),
        grid_spec=pltpu.PrefetchScalarGridSpec(
            num_scalar_prefetch=0,
            grid=(num_i,),
            in_specs=[
                pl.BlockSpec((tile_m, C), lambda i: (i, 0)),   # logits
                pl.BlockSpec((tile_m, 1), lambda i: (i, 0)),   # targets
            ],
            out_specs=pl.BlockSpec((tile_m, 1), lambda i: (i, 0)),
        ),
        compiler_params=pltpu.CompilerParams(
            dimension_semantics=("parallel",),
            vmem_limit_bytes=vmem_limit,
        ),
        cost_estimate=cost,
    )(x2, t2)
    return jnp.sum(partials)


# ----------------------------------------------------------------------------
# Public wrapper (matches the PyTorch module's forward semantics).
# ----------------------------------------------------------------------------
def label_smoothing_cross_entropy(logits, target, alpha=0.1, ignore_index=-100,
                                  reduction='mean', *, tile_cap=None):
    # TODO(synk): reduction='none' not implemented — with ignore_index filtering the
    # per-element output has a data-dependent shape; only 'mean'/'sum' supported.
    assert reduction in ('mean', 'sum')

    if logits.ndim > 2:
        # NCHW(...) fast path: transpose fused into the BlockSpec (class on sublanes).
        N, C = logits.shape[0], logits.shape[1]
        x3 = logits.reshape(N, C, -1)                       # metadata-only reshape
        t3 = target.reshape(N, 1, -1).astype(jnp.int32)
        total = _launch_cols(x3, t3, alpha, ignore_index,
                             65536 if tile_cap is None else tile_cap)
        tgt_flat = t3
        n_elem = N * x3.shape[-1]
    else:
        M, C = logits.shape
        t2 = target.reshape(-1, 1).astype(jnp.int32)
        if C >= 32:
            # Row-major kernel: class axis stays lane-resident, no HBM transpose.
            total = _launch_rows(logits, t2, alpha, ignore_index,
                                 32768 if tile_cap is None else tile_cap)
        else:
            # Lane efficiency of the row layout would be <25% for tiny C; one extra
            # HBM pass for the transpose is cheaper — reuse the column kernel.
            x3 = jnp.transpose(logits, (1, 0)).reshape(1, C, M)
            t3 = t2.reshape(1, 1, M)
            total = _launch_cols(x3, t3, alpha, ignore_index,
                                 65536 if tile_cap is None else tile_cap)
        tgt_flat = t2
        n_elem = M

    if reduction == 'sum':
        return total
    # 'mean': valid-element count computed in plain JAX from the (tiny) targets.
    if ignore_index >= 0:
        cnt = jnp.sum((tgt_flat != ignore_index).astype(jnp.float32))
        # NOTE: all-ignored + mean => NaN/Inf (division by zero), matching PyTorch.
        return total / cnt
    return total / n_elem


# ----------------------------------------------------------------------------
# Pure-JAX reference for correctness checks.
# ----------------------------------------------------------------------------
def _reference(logits, target, alpha=0.1, ignore_index=-100, reduction='mean'):
    if logits.ndim > 2:
        N, C = logits.shape[0], logits.shape[1]
        x = jnp.transpose(logits.reshape(N, C, -1), (0, 2, 1)).reshape(-1, C)
        t = target.reshape(-1)
    else:
        x, t = logits, target.reshape(-1)
    x = x.astype(jnp.float32)
    logp = jax.nn.log_softmax(x, axis=-1)
    nll = -jnp.take_along_axis(logp, t[:, None].astype(jnp.int32), axis=-1)[:, 0]
    smooth = -jnp.mean(logp, axis=-1)
    loss = (1.0 - alpha) * nll + alpha * smooth
    if ignore_index >= 0:
        m = (t != ignore_index)
        loss = jnp.where(m, loss, 0.0)
        n = jnp.sum(m)
    else:
        n = loss.shape[0]
    return jnp.sum(loss) / n if reduction == 'mean' else jnp.sum(loss)


if __name__ == "__main__":
    key = jax.random.PRNGKey(0)
    k1, k2, k3, k4, k5, k6 = jax.random.split(key, 6)

    # 1) module-implied shapes: logits NCHW, integer class targets NHW (f32, mean)
    N, C, H, W = 2, 4, 16, 16
    logits = jax.random.normal(k1, (N, C, H, W), dtype=jnp.float32)
    target = jax.random.randint(k2, (N, H, W), 0, C, dtype=jnp.int32)
    out1 = jax.block_until_ready(label_smoothing_cross_entropy(logits, target))
    ref1 = _reference(logits, target)
    assert jnp.allclose(out1, ref1, atol=1e-5, rtol=1e-5), (out1, ref1)

    # 2) bf16 logits streamed without host-side cast, ignore_index, sum reduction
    out2 = jax.block_until_ready(label_smoothing_cross_entropy(
        logits.astype(jnp.bfloat16), target, alpha=0.1, ignore_index=2, reduction='sum'))
    ref2 = _reference(logits.astype(jnp.bfloat16), target, alpha=0.1, ignore_index=2,
                      reduction='sum')
    assert jnp.allclose(out2, ref2, atol=1e-3, rtol=1e-4), (out2, ref2)

    # 3) ragged multi-tile column path (forced small tile) + ignore_index + mean
    lg3 = jax.random.normal(k3, (1, 4, 10, 13), dtype=jnp.float32)
    tg3 = jax.random.randint(k4, (1, 10, 13), 0, 4, dtype=jnp.int32)
    out3 = jax.block_until_ready(label_smoothing_cross_entropy(
        lg3, tg3, alpha=0.2, ignore_index=1, reduction='mean', tile_cap=128))
    ref3 = _reference(lg3, tg3, alpha=0.2, ignore_index=1, reduction='mean')
    assert jnp.allclose(out3, ref3, atol=1e-5, rtol=1e-5), (out3, ref3)

    # 4) 2D (tokens, C) path with lane-resident classes (row kernel), ragged tiles
    lg4 = jax.random.normal(k5, (40, 128), dtype=jnp.float32)
    tg4 = jax.random.randint(k6, (40,), 0, 128, dtype=jnp.int32)
    out4 = jax.block_until_ready(label_smoothing_cross_entropy(
        lg4, tg4, alpha=0.1, ignore_index=3, reduction='mean', tile_cap=16))
    ref4 = _reference(lg4, tg4, alpha=0.1, ignore_index=3, reduction='mean')
    assert jnp.allclose(out4, ref4, atol=1e-5, rtol=1e-5), (out4, ref4)

    # 5) 2D small-C path (transpose fallback into the column kernel), sum reduction
    lg5 = jax.random.normal(k1, (37, 8), dtype=jnp.float32)
    tg5 = jax.random.randint(k2, (37,), 0, 8, dtype=jnp.int32)
    out5 = jax.block_until_ready(label_smoothing_cross_entropy(
        lg5, tg5, alpha=0.1, ignore_index=-100, reduction='sum'))
    ref5 = _reference(lg5, tg5, alpha=0.1, ignore_index=-100, reduction='sum')
    assert jnp.allclose(out5, ref5, atol=1e-4, rtol=1e-5), (out5, ref5)

    print("KERNEL_OK")
</pallas_src>

<mosaic_0001>
module attributes {stable_mosaic.version = 11 : i64} {
  func.func @_ls_ce_cols_kernel(%arg0: i32, %arg1: i32, %arg2: memref<1x4x256xf32, #tpu.memory_space<vmem>>, %arg3: memref<1x1x256xi32, #tpu.memory_space<vmem>>, %arg4: memref<1x1x1x256xf32, #tpu.memory_space<vmem>>) attributes {dimension_semantics = [#tpu.dimension_semantics<parallel>, #tpu.dimension_semantics<parallel>], iteration_bounds = array<i64: 2, 1>, scalar_prefetch = 0 : i64, scratch_operands = 0 : i64, tpu.core_type = #tpu.core_type<tc>, window_params = [{transform_indices = @transform_0, window_bounds = array<i64: 1, 4, 256>}, {transform_indices = @transform_1, window_bounds = array<i64: 1, 1, 256>}, {transform_indices = @transform_2, window_bounds = array<i64: 1, 1, 1, 256>}]} {
    %c0 = arith.constant 0 : index
    %c0_0 = arith.constant 0 : index
    %c0_1 = arith.constant 0 : index
    %0 = vector.load %arg2[%c0, %c0_0, %c0_1] : memref<1x4x256xf32, #tpu.memory_space<vmem>>, vector<1x4x256xf32>
    %1 = vector.shape_cast %0 : vector<1x4x256xf32> to vector<4x256xf32>
    %c0_2 = arith.constant 0 : index
    %c0_3 = arith.constant 0 : index
    %c0_4 = arith.constant 0 : index
    %2 = vector.load %arg3[%c0_2, %c0_3, %c0_4] : memref<1x1x256xi32, #tpu.memory_space<vmem>>, vector<1x1x256xi32>
    %3 = vector.shape_cast %2 : vector<1x1x256xi32> to vector<1x256xi32>
    %cst = arith.constant dense<0xFF800000> : vector<256xf32>
    %4 = vector.multi_reduction <maximumf>, %1, %cst [0] : vector<4x256xf32> to vector<256xf32>
    %5 = vector.shape_cast %4 : vector<256xf32> to vector<1x256xf32>
    %6 = vector.broadcast %5 : vector<1x256xf32> to vector<4x256xf32>
    %7 = arith.subf %1, %6 : vector<4x256xf32>
    %8 = math.exp %7 : vector<4x256xf32>
    %cst_5 = arith.constant dense<0.000000e+00> : vector<256xf32>
    %9 = vector.multi_reduction <add>, %8, %cst_5 [0] : vector<4x256xf32> to vector<256xf32>
    %10 = vector.shape_cast %9 : vector<256xf32> to vector<1x256xf32>
    %11 = math.log %10 : vector<1x256xf32>
    %12 = arith.addf %5, %11 : vector<1x256xf32>
    %13 = tpu.iota {dimensions = array<i32: 0>} : vector<4x256xi32>
    %14 = vector.broadcast %3 : vector<1x256xi32> to vector<4x256xi32>
    %15 = arith.cmpi eq, %13, %14 : vector<4x256xi32>
    %cst_6 = arith.constant 9.250000e-01 : f32
    %cst_7 = arith.constant 2.500000e-02 : f32
    %16 = vector.broadcast %cst_6 : f32 to vector<4x256xf32>
    %17 = vector.broadcast %cst_7 : f32 to vector<4x256xf32>
    %18 = arith.select %15, %16, %17 : vector<4x256xi1>, vector<4x256xf32>
    %19 = arith.mulf %18, %1 : vector<4x256xf32>
    %cst_8 = arith.constant dense<0.000000e+00> : vector<256xf32>
    %20 = vector.multi_reduction <add>, %19, %cst_8 [0] : vector<4x256xf32> to vector<256xf32>
    %21 = vector.shape_cast %20 : vector<256xf32> to vector<1x256xf32>
    %22 = arith.subf %12, %21 : vector<1x256xf32>
    %c0_9 = arith.constant 0 : index
    %c0_10 = arith.constant 0 : index
    %c0_11 = arith.constant 0 : index
    %c0_12 = arith.constant 0 : index
    %23 = vector.load %arg4[%c0_9, %c0_10, %c0_11, %c0_12] : memref<1x1x1x256xf32, #tpu.memory_space<vmem>>, vector<1x1x1x256xf32>
    %24 = vector.shape_cast %23 : vector<1x1x1x256xf32> to vector<1x256xf32>
    %25 = vector.shape_cast %22 : vector<1x256xf32> to vector<1x1x1x256xf32>
    tpu.vector_store %arg4[%c0_9, %c0_10, %c0_11, %c0_12], %25 {strides = array<i32>} : memref<1x1x1x256xf32, #tpu.memory_space<vmem>>, vector<1x1x1x256xf32>,
    return
  }
  func.func @transform_0(%arg0: i32, %arg1: i32) -> (i32, i32, i32) {
    %c0_i32 = arith.constant 0 : i32
    %c0_i32_0 = arith.constant 0 : i32
    return %arg0, %c0_i32, %arg1 : i32, i32, i32
  }
  func.func @transform_1(%arg0: i32, %arg1: i32) -> (i32, i32, i32) {
    %c0_i32 = arith.constant 0 : i32
    %c0_i32_0 = arith.constant 0 : i32
    return %arg0, %c0_i32, %arg1 : i32, i32, i32
  }
  func.func @transform_2(%arg0: i32, %arg1: i32) -> (i32, i32, i32, i32) {
    %c0_i32 = arith.constant 0 : i32
    %c0_i32_0 = arith.constant 0 : i32
    %c0_i32_1 = arith.constant 0 : i32
    return %arg0, %arg1, %c0_i32, %c0_i32_0 : i32, i32, i32, i32
  }
}

</mosaic_0001>

<bundles_post_ra>
// kernel: tpu_custom_call.1
= control target key start
LH: loop header
LB: loop body
LE: loop exit
PB: predicated region body
PF: predicated region fallthrough
CT: control target
= control target key end

     0   :  { %7 = vsyncpa [#allocation3], 0  ;;  %s947_s0 = inlined_call_operand.hbm [shape: f32[2,4,256], index: 0, kind: input, shape index: {}]   ;;  %s948_s1 = inlined_call_operand.hbm [shape: s32[2,1,256], index: 1, kind: input, shape index: {}]   ;;  %s949_s2 = inlined_call_operand.hbm [shape: f32[2,1,1,256], index: 2, kind: output, shape index: {}]  }
   0x1   :  { %9 = vsyncpa [#allocation3 + $0x1], 0 }
   0x2   :  { %10 = vsyncpa [#allocation6], 0 }
   0x3   :  { %12 = vsyncpa [#allocation6 + $0x1], 0 }
   0x4   :  { %13 = vsyncpa [#allocation4], 0 }
   0x5   :  { %15 = vsyncpa [#allocation4 + $0x1], 0  ;;  %s720_s9 = smov 0   ;;  %s722_s10 = smov 0  }
   0x6   :  { %s724_s11 = smov 0   ;;  %s726_s12 = smov 0  }
   0x7   :  { %s728_s13 = smov 0   ;;  %s730_s14 = smov 0  }
   0x8 LB: > { %s454_s15 = sadd.s32 4294967295, %s698_s14   ;;  %s455_s16 = sadd.s32 4294967294, %s698_s14   ;;  %s698_s14 = sphi %s730_s14, %s21_s14   ;;  %s694_s13 = sphi %s728_s13, %s969_s13   ;;  %s690_s12 = sphi %s726_s12, %s968_s12   ;;  %s686_s11 = sphi %s724_s11, %s967_s11   ;;  %s682_s10 = sphi %s722_s10, %s966_s10   ;;  %s678_s9 = sphi %s720_s9, %s965_s9  }
   0x9   : > { %s33_s17 = sadd.s32 1, %s694_s13  ;;  %s42_s18 = sadd.s32 1, %s686_s11 }
   0xa   : > { %p35_p0 = scmp.ge.s32.totalorder %s33_s17, 2  ;;  %p49_p1 = scmp.ne.s32.totalorder %s686_s11, %s682_s10 }
   0xb   : > { %p50_p2 = scmp.eq.s32.totalorder %s698_s14, 0  ;;  %p55_p3 = scmp.ne.s32.totalorder %s682_s10, %s678_s9 }
   0xc   : > { %s971_s17 = smov (%p35_p0, %s33_s17), 0  ;;  %p56_p5 = scmp.eq.s32.totalorder %s454_s15, 0 }
   0xd   : > { %p761_p4 = por %p50_p2, %p49_p1  ;;  %s37_s20 = ssub.s32 %s694_s13, %s971_s17 }
   0xe   : > { %p109_p6 = scmp.eq.s32.totalorder %s454_s15, 1  ;;  %p40_p7 = scmp.eq.s32.totalorder %s37_s20, 0 }
   0xf   : > { %p767_p8 = por %p56_p5, %p55_p3  ;;  %p115_p10 = scmp.eq.s32.totalorder %s455_s16, 1 }
  0x10   : > { %p771_p9 = por %p109_p6, %p49_p1  ;;  %p493_p13 = scmp.lt.s32.totalorder %s698_s14, 2 }
  0x11   : > { %s953_s21 = scalar_select %p767_p8, 1, 0 }
  0x12   : > { %s954_s22 = scalar_select %p771_p9, 1, 0 }
  0x13   : > { %s776_s23 = scalar_select %p40_p7, %s686_s11, %s42_s18  }
  0x14   : > { %p778_p11 = por %p115_p10, %p55_p3  ;;  %s785_s25 = sand.u32 1, %s686_s11  }
  0x15   : > { %s458_s26 = sshll.u32 %s785_s25, 3  ;;  %s473_s27 = sshll.u32 %s694_s13, 7 }
  0x16   : > { %s955_s24 = scalar_select %p778_p11, 1, 0 }
  0x17   : > { %s792_s30 = scalar_lea.hbm %s947_s0, %s473_s27  ;;  %s139_s3 = scalar_lea.vmem [#allocation2], %s458_s26 }
  0x18   : > { %s149_s4 = sshll.u32 %s139_s3, 4  ;;  %p798_p0 = pnand %p493_p13, %p761_p4  ;;  %s794_s4 = int_to_ptr.vmem [resolvable:$true] %s149_s4 }
  0x19   : > { %s136_s6 = scalar_lea.sflag [#allocation3], %s785_s25  ;;  %s552_s7 = scalar_lea.hbm %s792_s30, 128 }
  0x1a   : > { %p553_p3 = scmp.ne.s32.totalorder %s792_s30, %s552_s7  ;;  %p554_p5 = pneg %p798_p0 }
  0x1b   : > { %s557_s16 = scalar_lea.hbm %s947_s0, 256  ;;  %p558_p4 = scmp.lt.u32.totalorder %s792_s30, %s947_s0 }
  0x1c   : > { %p555_p6 = pnand %p554_p5, %p553_p3  ;;  %p559_p10 = scmp.lt.u32.totalorder %s557_s16, %s552_s7 }
  0x1d   : > { %p561_p12 = scmp.lt.u32.totalorder %s552_s7, %s792_s30 }
  0x1e   : > { %p556_p7 = pneg %p555_p6  ;;  %p560_p13 = por %p559_p10, %p558_p4 }
  0x20   : > { %p562_p1 = por %p561_p12, %p560_p13 }
  0x22   : > { %p563_p2 = pnand %p562_p1, %p556_p7 }
  0x24   : > { %566 = shalt.err (!%p563_p2)
}
  0x25   : > { %s567_s20 = scalar_lea.vmem %s794_s4, 128  ;;  %s700_s26 = smov [#allocation2]  }
  0x26   : > { %p568_p3 = scmp.ne.s32.totalorder %s794_s4, %s567_s20  ;;  %s572_s27 = sshll.u32 %s700_s26, 4  ;;  %s573_s27 = int_to_ptr.vmem [resolvable:$false] %s572_s27 }
  0x27   : > { %s574_s28 = scalar_lea.vmem %s573_s27, 256  ;;  %p575_p9 = scmp.lt.s32.totalorder %s794_s4, %s573_s27 }
  0x28   : > { %p570_p6 = pnand %p568_p3, %p554_p5  ;;  %p576_p4 = scmp.lt.s32.totalorder %s574_s28, %s567_s20 }
  0x2a   : > { %p571_p11 = pneg %p570_p6  ;;  %p577_p10 = por %p576_p4, %p575_p9 }
  0x2c   : > { %p578_p12 = pnand %p577_p10, %p571_p11 }
  0x2e   : > { %581 = shalt.err (!%p578_p12)
}
  0x2f   : > { %485 = dma.hbm_to_vmem [thread:$0]  (!%p798_p0), %s792_s30, 128, %s794_s4, %s136_s6  }
  0x30   : > { %p957_p1 = scmp.lt.s32.totalorder %s698_s14, 3  ;;  %p958_p2 = scmp.ge.s32.totalorder %s698_s14, 1 }
  0x31   : > { %s461_s3 = sshll.u32 %s785_s25, 1  ;;  %s474_s7 = sshll.u32 %s694_s13, 5 }
  0x32   : > { %p834_p7 = pnand %p958_p2, %p957_p1  ;;  %s843_s16 = scalar_lea.hbm %s948_s1, %s474_s7 }
  0x33   : > { %s160_s18 = scalar_lea.vmem [#allocation5], %s461_s3  ;;  %s157_s30 = scalar_lea.sflag [#allocation6], %s785_s25 }
  0x34   : > { %s959_s29 = scalar_select %p834_p7, 1, 0 }
  0x35   : > { %s170_s19 = sshll.u32 %s160_s18, 4  ;;  %s582_s4 = scalar_lea.hbm %s843_s16, 32  ;;  %s171_s19 = int_to_ptr.vmem [resolvable:$true] %s170_s19 }
  0x36   : > { %p583_p9 = scmp.ne.s32.totalorder %s843_s16, %s582_s4  ;;  %s587_s26 = scalar_lea.hbm %s948_s1, 64 }
  0x37   : > { %p588_p3 = scmp.lt.u32.totalorder %s843_s16, %s948_s1  ;;  %p589_p6 = scmp.lt.u32.totalorder %s587_s26, %s582_s4 }
  0x38   : > { %p585_p11 = pnand %p583_p9, %p554_p5  ;;  %p591_p10 = scmp.lt.u32.totalorder %s582_s4, %s843_s16 }
  0x39   : > { %p590_p4 = por %p589_p6, %p588_p3 }
  0x3a   : > { %p586_p13 = pneg %p585_p11 }
  0x3b   : > { %p592_p12 = por %p591_p10, %p590_p4 }
  0x3d   : > { %p593_p1 = pnand %p592_p12, %p586_p13 }
  0x3f   : > { %596 = shalt.err (!%p593_p1)
}
  0x40   : > { %s597_s25 = scalar_lea.vmem %s171_s19, 32  ;;  %s701_s3 = smov [#allocation5]  }
  0x41   : > { %p598_p2 = scmp.ne.s32.totalorder %s171_s19, %s597_s25  ;;  %s602_s7 = sshll.u32 %s701_s3, 4  ;;  %s603_s7 = int_to_ptr.vmem [resolvable:$false] %s602_s7 }
  0x42   : > { %s604_s8 = scalar_lea.vmem %s603_s7, 64  ;;  %p605_p8 = scmp.lt.s32.totalorder %s171_s19, %s603_s7 }
  0x43   : > { %p600_p9 = pnand %p598_p2, %p554_p5  ;;  %p606_p7 = scmp.lt.s32.totalorder %s604_s8, %s597_s25 }
  0x45   : > { %p601_p11 = pneg %p600_p9  ;;  %p607_p3 = por %p606_p7, %p605_p8 }
  0x47   : > { %p608_p6 = pnand %p607_p3, %p601_p11 }
  0x49   : > { %611 = shalt.err (!%p608_p6)
}
  0x4a   : > { %488 = dma.hbm_to_vmem [thread:$0]  (!%p798_p0), %s843_s16, 32, %s171_s19, %s157_s30  }
  0x4b   : > { %p960_p13 = scmp.ne.s32.totalorder %s959_s29, 0 }
  0x4c   : > { %s868_s15 = sand.u32 (!%p960_p13), 1, %s682_s10   ;;  %p961_p5 = scmp.ne.s32.totalorder (!%p960_p13), %s953_s21, 0 }
  0x4d   : > { %179 = sbr.rel (%p960_p13) target bundleno = 173 (0xad), region = 28  ;;  %s465_s18 = sshll.u32 (!%p960_p13), %s868_s15, 3 }
  0x4e   : > { %s182_s4 = scalar_lea.sflag (!%p960_p13), [#allocation3], %s868_s15  ;;  %s185_s6 = scalar_lea.vmem (!%p960_p13), [#allocation2], %s465_s18 }
  0x54   : > { %665 = dma.done.wait (%p961_p5), %s182_s4, 128  }
  0x55   : > { %667 = vsyncadd (%p961_p5), %s182_s4, 4294967168  ;;  %s466_s5 = sshll.u32 %s868_s15, 1  ;;  %s191_s29 = scalar_lea.sflag [#allocation6], %s868_s15 }
  0x56   : > { %s194_s16 = scalar_lea.vmem [#allocation5], %s466_s5 }
  0x57   : > { %669 = dma.done.wait (%p961_p5), %s191_s29, 32  }
  0x58   : > { %671 = vsyncadd (%p961_p5), %s191_s29, 4294967264  ;;  %vm227_vm0 = vcmask 1043456   ;;  %v222_v0 = vld [vmem:[%s185_s6] sm:$0xff]  ;;  %v272_v11 = vlaneseq  ;;  %v223_v20 = vld [vmem:[%s194_s16] sm:$0x3]  ;;  %s219_s21 = scalar_lea.vmem [#allocation7], %s466_s5 }
  0x59   : > { %v225_v1 = vcombine.high %v222_v0, %v222_v0  ;;  %v228_v2 = vsel %vm227_vm0, %v222_v0, -inf  ;;  %v702_v26 = vmov 0.025   ;;  %v703_v59 = vmov 1966171168   ;;  %s344_s19 = sshll.u32 %s219_s21, 4  ;;  %s895_s19 = int_to_ptr.vmem [resolvable:$true] %s344_s19 }
  0x5a   : > { %v229_v3 = vrot.slane %v228_v2, 4  ;;  %v273_v16 = vshrl.u32 %v272_v11, 7  ;;  %v308_v60 = vunpack.c.l.s4 %v703_v59  ;;  %s475_s30 = sshll.u32 %s690_s12, 5  ;;  %vm324_vm3 = vcmp.lt.s32.totalorder %v272_v11, 256  ;;  %s328_s28 = scalar_lea.sflag [#allocation4], %s868_s15 }
  0x5b   : > { %v235_v4 = vsel %vm227_vm0, %v225_v1, -inf  ;;  %s900_s27 = scalar_lea.hbm %s949_s2, %s475_s30  ;;  %s612_s25 = scalar_lea.vmem %s895_s19, 32 }
  0x5c   : > { %v230_v5 = vmax.f32 %v228_v2, %v229_v3  ;;  %v236_v6 = vrot.slane %v235_v4, 4  ;;  %v276_v19 = vsub.s32 0, %v273_v16  ;;  %v280_v22 = vsub.s32 1, %v273_v16  ;;  %p613_p8 = scmp.ne.s32.totalorder %s895_s19, %s612_s25  ;;  %p962_p0 = scmp.ne.s32.totalorder %s954_s22, 0 }
  0x5d   : > { %s704_s12 = smov [#allocation7]  }
  0x5e   : > { %v231_v7 = vrot.slane %v230_v5, 2  ;;  %v237_v8 = vmax.f32 %v235_v4, %v236_v6  ;;  %v277_v24 = vrot.slane %v223_v20, %v276_v19  ;;  %v281_v25 = vrot.slane %v223_v20, %v280_v22  ;;  %p614_p7 = pnand %p613_p8, %p962_p0  ;;  %s616_s3 = sshll.u32 %s704_s12, 4  ;;  %s617_s3 = int_to_ptr.vmem [resolvable:$false] %s616_s3 }
  0x5f   : > { %v309_v4 = vunpack.c.0.s8 %v308_v60  ;;  %s618_s7 = scalar_lea.vmem %s617_s3, 64  ;;  %p619_p10 = scmp.lt.s32.totalorder %s895_s19, %s617_s3 }
  0x60   : > { %v232_v9 = vmax.f32 %v230_v5, %v231_v7  ;;  %v238_v10 = vrot.slane %v237_v8, 2  ;;  %vm282_vm1 = vcmp.eq.s32.totalorder %v273_v16, %v277_v24  ;;  %vm283_vm2 = vcmp.eq.s32.totalorder %v273_v16, %v281_v25  ;;  %p615_p4 = pneg %p614_p7  ;;  %p620_p12 = scmp.lt.s32.totalorder %s618_s7, %s612_s25 }
  0x61   : > { %v284_v27 = vsel %vm282_vm1, 0.925, %v702_v26  ;;  %v285_v28 = vsel %vm283_vm2, 0.925, %v702_v26 }
  0x62   : > { %v233_v12 = vrot.slane %v232_v9, 1  ;;  %v239_v13 = vmax.f32 %v237_v8, %v238_v10  ;;  %v286_v29 = vmul.f32 %v284_v27, %v222_v0  ;;  %v287_v31 = vmul.f32 %v285_v28, %v225_v1  ;;  %p621_p1 = por %p620_p12, %p619_p10 }
  0x63   : > { %v312_v8 = vsub.s32 %v309_v4, %v273_v16 }
  0x64   : > { %v234_v14 = vmax.f32 %v232_v9, %v233_v12  ;;  %v240_v15 = vrot.slane %v239_v13, 1  ;;  %v288_v35 = vsel %vm227_vm0, %v286_v29, 0.0  ;;  %v295_v39 = vsel %vm227_vm0, %v287_v31, 0.0  ;;  %p622_p2 = pnand %p621_p1, %p615_p4 }
  0x65   : > { %v289_v40 = vrot.slane %v288_v35, 4  ;;  %v296_v43 = vrot.slane %v295_v39, 4 }
  0x66   : > { %v241_v17 = vmax.f32 %v239_v13, %v240_v15 }
  0x67   : > { %v290_v46 = vadd.f32 %v289_v40, %v288_v35  ;;  %v297_v49 = vadd.f32 %v296_v43, %v295_v39 }
  0x68   : > { %v244_v18 = vcombine.low %v234_v14, %v241_v17 }
  0x69   : > { %v291_v52 = vrot.slane %v290_v46, 2  ;;  %v298_v54 = vrot.slane %v297_v49, 2 }
  0x6a   : > { %v246_v21 = vsub.f32 %v222_v0, %v244_v18 }
  0x6b   : > { %v292_v55 = vadd.f32 %v291_v52, %v290_v46  ;;  %v299_v56 = vadd.f32 %v298_v54, %v297_v49 }
  0x6c   : > { %v247_v23 = vmul.f32 1.442695, %v246_v21 }
  0x6d   : > { %v293_v57 = vrot.slane %v292_v55, 1  ;;  %v300_v58 = vrot.slane %v299_v56, 1 }
  0x6e   : > { %546 = vpow2.f32 %v247_v23 }
  0x6f   : > { %v294_v63 = vadd.f32 %v293_v57, %v292_v55  ;;  %v301_v3 = vadd.f32 %v300_v58, %v299_v56 }
  0x78   : > { %v547_v30 = vpop.eup %546 }
  0x79   : > { %v250_v32 = vcombine.high %v547_v30, %v547_v30  ;;  %v252_v33 = vsel %vm227_vm0, %v547_v30, 0.0 }
  0x7a   : > { %v253_v34 = vrot.slane %v252_v33, 4 }
  0x7b   : > { %v259_v36 = vsel %vm227_vm0, %v250_v32, 0.0 }
  0x7c   : > { %v254_v37 = vadd.f32 %v253_v34, %v252_v33  ;;  %v260_v38 = vrot.slane %v259_v36, 4 }
  0x7e   : > { %v255_v41 = vrot.slane %v254_v37, 2  ;;  %v261_v42 = vadd.f32 %v260_v38, %v259_v36 }
  0x80   : > { %v256_v44 = vadd.f32 %v255_v41, %v254_v37  ;;  %v262_v45 = vrot.slane %v261_v42, 2 }
  0x82   : > { %v257_v47 = vrot.slane %v256_v44, 1  ;;  %v263_v48 = vadd.f32 %v262_v45, %v261_v42 }
  0x84   : > { %v258_v50 = vadd.f32 %v257_v47, %v256_v44  ;;  %v264_v51 = vrot.slane %v263_v48, 1 }
  0x86   : > { %v265_v53 = vadd.f32 %v264_v51, %v263_v48  ;;  %548 = vlog2.f32 %v258_v50 }
  0x88   : > { %550 = vlog2.f32 %v265_v53 }
  0x90   : > { %v549_v61 = vpop.eup %548 }
  0x91   : > { %v267_v62 = vmul.f32 0.6931472, %v549_v61 }
  0x92   : > { %v551_v0 = vpop.eup %550 }
  0x93   : > { %v269_v1 = vmul.f32 0.6931472, %v551_v0  ;;  %v270_v2 = vadd.f32 %v267_v62, %v234_v14 }
  0x95   : > { %v271_v5 = vadd.f32 %v269_v1, %v241_v17  ;;  %v302_v6 = vsub.f32 %v270_v2, %v294_v63 }
  0x97   : > { %v303_v7 = vsub.f32 %v271_v5, %v301_v3 }
  0x99   : > { %v306_v9 = vcombine.low %v302_v6, %v303_v7 }
  0x9b   : > { %v313_v10 = vrot.slane %v306_v9, %v312_v8 }
  0x9d   : > { %v320_v12 = vrot.slane %v313_v10, %v312_v8 }
  0x9f   : > { %326 = vst.msk [vmem:[%s219_s21] sm:$0x3] %vm324_vm3, %v320_v12 }
  0xa0   : > { %625 = shalt.err (!%p622_p2)
}
  0xa1   : > { %s626_s8 = scalar_lea.hbm %s900_s27, 32  ;;  %s630_s4 = scalar_lea.hbm %s949_s2, 64 }
  0xa2   : > { %p627_p9 = scmp.ne.s32.totalorder %s900_s27, %s626_s8  ;;  %p631_p6 = scmp.lt.u32.totalorder %s900_s27, %s949_s2 }
  0xa3   : > { %p632_p13 = scmp.lt.u32.totalorder %s630_s4, %s626_s8  ;;  %p634_p8 = scmp.lt.u32.totalorder %s626_s8, %s900_s27 }
  0xa4   : > { %p628_p11 = pnand %p627_p9, %p962_p0 }
  0xa5   : > { %p633_p5 = por %p632_p13, %p631_p6 }
  0xa6   : > { %p629_p3 = pneg %p628_p11 }
  0xa7   : > { %p635_p7 = por %p634_p8, %p633_p5 }
  0xa9   : > { %p636_p4 = pnand %p635_p7, %p629_p3 }
  0xab   : > { %639 = shalt.err (!%p636_p4)
}
  0xac   : > { %480 = dma.vmem_to_hbm [thread:$0]  (%p962_p0), %s895_s19, 32, %s900_s27, %s328_s28  }
  0xad PF: > { %s356_s29 = sand.u32 1, %s678_s9   ;;  %p963_p10 = scmp.ne.s32.totalorder %s955_s24, 0 }
  0xae   : > { %p964_p12 = scmp.ge.s32.totalorder %s698_s14, 2  ;;  %s357_s16 = scalar_lea.sflag [#allocation4], %s356_s29 }
  0xb0   : > { %p490_p1 = pnand %p964_p12, %p963_p10 }
  0xb2   : > { %673 = dma.done.wait (!%p490_p1), %s357_s16, 32  }
  0xb3   : > { %675 = vsyncadd (!%p490_p1), %s357_s16, 4294967264  ;;  %s21_s14 = sadd.s32 1, %s698_s14   ;;  %s965_s9 = smov %s682_s10 }
  0xb4   : > { %p18_p2 = scmp.ge.s32.totalorder %s21_s14, 4   ;;  %s966_s10 = smov %s686_s11 }
  0xb5   : > { %s967_s11 = smov %s776_s23  ;;  %s968_s12 = smov %s694_s13 }
  0xb6   : > { %s969_s13 = smov %s971_s17  ;;  %20 = sbr.rel (!%p18_p2) target bundleno = 8 (0x8), region = 86 }
  0xbd   :  { %362 = vsyncpa [#allocation3], 1 }
  0xbe   :  { %364 = vsyncpa [#allocation3 + $0x1], 1 }
  0xbf   :  { %365 = vsyncpa [#allocation6], 1 }
  0xc0   :  { %367 = vsyncpa [#allocation6 + $0x1], 1 }
  0xc1   :  { %368 = vsyncpa [#allocation4], 1 }
  0xc2   :  { %370 = vsyncpa [#allocation4 + $0x1], 1 }

</bundles_post_ra>
